<compile_context>
chip_gen: v5e
topology: v5e:2x2
jax: 0.10.0
libtpu: 0.0.40
codegen_flags: <defaults>
</compile_context>

<pallas_src>
import math
import jax
import jax.numpy as jnp
from jax import lax
from jax.experimental import pallas as pl
from jax.experimental.pallas import tpu as pltpu


def _round_up(x, m):
    return ((x + m - 1) // m) * m


def value_net_kernel(x_ref, w1_ref, b1_ref, w2_ref, b2_ref, w3t_ref, b3_ref, ot_ref):
    # x   : (TB, In)  f32   -- original (batch, features) layout, contiguous DMA
    # w1  : (H, In)   bf16     b1 : (H, 1) f32
    # w2  : (H, H)    bf16     b2 : (H, 1) f32
    # w3t : (H, 1)    f32      b3 : (1,)   f32 in SMEM
    # ot  : (1, TB)   f32   -- lane-dense output (batch on lanes)
    x = x_ref[...].astype(jnp.bfloat16)            # cast in-kernel; no extra HBM pass

    # h1 = relu(W1 @ x^T + b1): contract the feature axes -> (H, TB), batch on lanes.
    h1 = lax.dot_general(
        w1_ref[...], x, (((1,), (1,)), ((), ())),
        preferred_element_type=jnp.float32,
    ) + b1_ref[...]
    h1 = jnp.maximum(h1, 0.0)                      # f32 elementwise (v5e-safe)

    # h2 = relu(W2 @ h1 + b2), bf16 operands, f32 accumulation.
    h2 = jnp.dot(
        w2_ref[...], h1.astype(jnp.bfloat16),
        preferred_element_type=jnp.float32,
    ) + b2_ref[...]
    h2 = jnp.maximum(h2, 0.0)                      # (H, TB) f32

    # Layer 3 is a degenerate (1, H) matmul: VPU multiply + XLU sublane reduce.
    out = jnp.sum(h2 * w3t_ref[...], axis=0, keepdims=True) + b3_ref[0]
    ot_ref[...] = out.astype(ot_ref.dtype)


def _choose_tiles(B, num_inputs, H, block_b):
    """Pick (tb, b_pad): pad batch only to a lane multiple, tb divides b_pad."""
    b_pad = _round_up(B, 128)
    # Approx. live VMEM bytes per batch lane in a tile:
    #   x f32 double-buffered (8*In) + bf16 copy (2*In)
    #   h1 f32 + h1 bf16 + h2 f32 (10*H)
    #   output f32 double-buffered (8)
    per_lane = 10 * num_inputs + 10 * H + 8
    budget = 36 * 1024 * 1024                      # leaves headroom inside v7x's 64 MiB
    tb_cap = max(128, (budget // per_lane) // 128 * 128)
    tb_cap = min(tb_cap, _round_up(block_b, 128), b_pad)
    # Largest multiple of 128 that divides b_pad and is <= tb_cap.
    n = b_pad // 128
    d = tb_cap // 128
    while n % d != 0:
        d -= 1
    tb = d * 128
    # Prefer an even grid length >= 2 when free (megacore batch sharding on v7x).
    if tb == b_pad and n % 2 == 0:
        tb = b_pad // 2
    return tb, b_pad


def value_network_forward(state, params, *, block_b=16384):
    """state: (B, num_inputs) f32 -> (B, 1) f32."""
    w1, b1, w2, b2, w3t, b3 = params
    B, num_inputs = state.shape
    H = w1.shape[0]

    tb, b_pad = _choose_tiles(B, num_inputs, H, block_b)

    # Pad batch only to the 128-lane requirement (no-op when B % 128 == 0).
    state_p = state if b_pad == B else jnp.pad(state, ((0, b_pad - B), (0, 0)))

    # VMEM limit from tile math (respects v7x's 64 MiB physical VMEM).
    per_lane = 10 * num_inputs + 10 * H + 8
    resident = 2 * (2 * (H * num_inputs + H * H) + 4 * 3 * H)   # dbl-buffered weights/biases
    vmem_limit = int(min(max(32 << 20, 2 * (tb * per_lane + resident)), 56 << 20))

    grid = (b_pad // tb,)

    out_t = pl.pallas_call(
        value_net_kernel,
        out_shape=jax.ShapeDtypeStruct((1, b_pad), jnp.float32),
        grid=grid,
        in_specs=[
            # state tile: walk the batch (sublane-major) axis; contiguous DMA.
            pl.BlockSpec((tb, num_inputs), lambda i: (i, 0)),
            # weights / biases: pinned VMEM-resident blocks (constant index_map).
            pl.BlockSpec((H, num_inputs), lambda i: (0, 0)),
            pl.BlockSpec((H, 1), lambda i: (0, 0)),
            pl.BlockSpec((H, H), lambda i: (0, 0)),
            pl.BlockSpec((H, 1), lambda i: (0, 0)),
            pl.BlockSpec((H, 1), lambda i: (0, 0)),
            # scalar output bias lives in SMEM.
            pl.BlockSpec(memory_space=pltpu.MemorySpace.SMEM),
        ],
        out_specs=pl.BlockSpec((1, tb), lambda i: (0, i)),
        compiler_params=pltpu.CompilerParams(
            dimension_semantics=("parallel",),     # shard batch tiles across TCs (v7x)
            vmem_limit_bytes=vmem_limit,
        ),
    )(state_p, w1, b1, w2, b2, w3t, b3)

    return out_t[0, :B].reshape(B, 1)


def xavier_uniform(key, out_features, in_features):
    # Matches torch.nn.init.xavier_uniform_(gain=1) on a (out, in) weight.
    bound = math.sqrt(6.0 / (in_features + out_features))
    return jax.random.uniform(
        key, (out_features, in_features), jnp.float32, minval=-bound, maxval=bound
    )


def init_value_network(key, num_inputs, hidden_dim):
    k1, k2, k3 = jax.random.split(key, 3)
    # w1/w2 stored bf16 for single-pass MXU matmuls (conscious deviation from f32 torch).
    w1 = xavier_uniform(k1, hidden_dim, num_inputs).astype(jnp.bfloat16)   # (H, In)
    w2 = xavier_uniform(k2, hidden_dim, hidden_dim).astype(jnp.bfloat16)   # (H, H)
    w3 = xavier_uniform(k3, 1, hidden_dim)                                 # (1, H) f32
    b1 = jnp.zeros((hidden_dim, 1), jnp.float32)   # column bias (broadcast on lanes)
    b2 = jnp.zeros((hidden_dim, 1), jnp.float32)
    b3 = jnp.zeros((1,), jnp.float32)              # scalar, kept in SMEM
    return (w1, b1, w2, b2, w3.T, b3)              # w3.T: (H, 1) f32


def value_network_ref(state, params):
    """Pure-JAX reference mirroring the kernel's bf16 matmul boundaries."""
    w1, b1, w2, b2, w3t, b3 = params
    x = state.astype(jnp.bfloat16)
    h1 = lax.dot_general(x, w1, (((1,), (1,)), ((), ())),
                         preferred_element_type=jnp.float32) + b1[:, 0]
    h1 = jnp.maximum(h1, 0.0)
    h2 = lax.dot_general(h1.astype(jnp.bfloat16), w2, (((1,), (1,)), ((), ())),
                         preferred_element_type=jnp.float32) + b2[:, 0]
    h2 = jnp.maximum(h2, 0.0)
    out = jnp.sum(h2 * w3t[:, 0][None, :], axis=1, keepdims=True) + b3
    return out


if __name__ == "__main__":
    key = jax.random.PRNGKey(0)
    k_param, k_state = jax.random.split(key)

    batch = 2
    num_inputs = 16
    hidden_dim = 32

    params = init_value_network(k_param, num_inputs, hidden_dim)
    state = jax.random.normal(k_state, (batch, num_inputs), jnp.float32)

    fwd = jax.jit(value_network_forward)
    out = jax.block_until_ready(fwd(state, params))

    ref = value_network_ref(state, params)
    assert out.shape == (batch, 1), out.shape
    assert jnp.allclose(out, ref, atol=1e-3, rtol=1e-3), (out, ref)

    print("KERNEL_OK")
</pallas_src>

<mosaic_0001>
module attributes {stable_mosaic.version = 11 : i64} {
  func.func @value_net_kernel(%arg0: i32, %arg1: memref<128x16xf32, #tpu.memory_space<vmem>>, %arg2: memref<32x16xbf16, #tpu.memory_space<vmem>>, %arg3: memref<32x1xf32, #tpu.memory_space<vmem>>, %arg4: memref<32x32xbf16, #tpu.memory_space<vmem>>, %arg5: memref<32x1xf32, #tpu.memory_space<vmem>>, %arg6: memref<32x1xf32, #tpu.memory_space<vmem>>, %arg7: memref<1xf32, #tpu.memory_space<smem>>, %arg8: memref<1x128xf32, #tpu.memory_space<vmem>>) attributes {dimension_semantics = [#tpu.dimension_semantics<parallel>], iteration_bounds = array<i64: 1>, scalar_prefetch = 0 : i64, scratch_operands = 0 : i64, tpu.core_type = #tpu.core_type<tc>, window_params = [{transform_indices = @transform_0, window_bounds = array<i64: 128, 16>}, {pipeline_mode = #tpu.pipeline_mode<synchronous>, transform_indices = @transform_1, window_bounds = array<i64: 32, 16>}, {pipeline_mode = #tpu.pipeline_mode<synchronous>, transform_indices = @transform_2, window_bounds = array<i64: 32, 1>}, {pipeline_mode = #tpu.pipeline_mode<synchronous>, transform_indices = @transform_3, window_bounds = array<i64: 32, 32>}, {pipeline_mode = #tpu.pipeline_mode<synchronous>, transform_indices = @transform_4, window_bounds = array<i64: 32, 1>}, {pipeline_mode = #tpu.pipeline_mode<synchronous>, transform_indices = @transform_5, window_bounds = array<i64: 32, 1>}, {transform_indices = @transform_6, window_bounds = array<i64: 1>}, {transform_indices = @transform_7, window_bounds = array<i64: 1, 128>}]} {
    %c0 = arith.constant 0 : index
    %c0_0 = arith.constant 0 : index
    %0 = vector.load %arg1[%c0, %c0_0] : memref<128x16xf32, #tpu.memory_space<vmem>>, vector<128x16xf32>
    %1 = arith.truncf %0 : vector<128x16xf32> to vector<128x16xbf16>
    %c0_1 = arith.constant 0 : index
    %c0_2 = arith.constant 0 : index
    %2 = vector.load %arg2[%c0_1, %c0_2] : memref<32x16xbf16, #tpu.memory_space<vmem>>, vector<32x16xbf16>
    %cst = arith.constant dense<0.000000e+00> : vector<32x128xf32>
    %3 = tpu.matmul %2, %1, %cst {dimension_numbers = #tpu.dot_dimension_numbers<[1], [1], [0], [0], [0, 0, 1, 0], [], []>} : vector<32x16xbf16>, vector<128x16xbf16>, vector<32x128xf32> -> vector<32x128xf32>
    %c0_3 = arith.constant 0 : index
    %c0_4 = arith.constant 0 : index
    %4 = vector.load %arg3[%c0_3, %c0_4] : memref<32x1xf32, #tpu.memory_space<vmem>>, vector<32x1xf32>
    %5 = vector.broadcast %4 : vector<32x1xf32> to vector<32x128xf32>
    %6 = arith.addf %3, %5 : vector<32x128xf32>
    %cst_5 = arith.constant 0.000000e+00 : f32
    %7 = vector.broadcast %cst_5 : f32 to vector<32x128xf32>
    %8 = arith.maximumf %6, %7 : vector<32x128xf32>
    %c0_6 = arith.constant 0 : index
    %c0_7 = arith.constant 0 : index
    %9 = vector.load %arg4[%c0_6, %c0_7] : memref<32x32xbf16, #tpu.memory_space<vmem>>, vector<32x32xbf16>
    %10 = arith.truncf %8 : vector<32x128xf32> to vector<32x128xbf16>
    %cst_8 = arith.constant dense<0.000000e+00> : vector<32x128xf32>
    %11 = tpu.matmul %9, %10, %cst_8 {dimension_numbers = #tpu.dot_dimension_numbers<[1], [0], [0], [1], [0, 0, 1, 1], [], []>} : vector<32x32xbf16>, vector<32x128xbf16>, vector<32x128xf32> -> vector<32x128xf32>
    %c0_9 = arith.constant 0 : index
    %c0_10 = arith.constant 0 : index
    %12 = vector.load %arg5[%c0_9, %c0_10] : memref<32x1xf32, #tpu.memory_space<vmem>>, vector<32x1xf32>
    %13 = vector.broadcast %12 : vector<32x1xf32> to vector<32x128xf32>
    %14 = arith.addf %11, %13 : vector<32x128xf32>
    %cst_11 = arith.constant 0.000000e+00 : f32
    %15 = vector.broadcast %cst_11 : f32 to vector<32x128xf32>
    %16 = arith.maximumf %14, %15 : vector<32x128xf32>
    %c0_12 = arith.constant 0 : index
    %c0_13 = arith.constant 0 : index
    %17 = vector.load %arg6[%c0_12, %c0_13] : memref<32x1xf32, #tpu.memory_space<vmem>>, vector<32x1xf32>
    %18 = vector.broadcast %17 : vector<32x1xf32> to vector<32x128xf32>
    %19 = arith.mulf %16, %18 : vector<32x128xf32>
    %cst_14 = arith.constant dense<0.000000e+00> : vector<128xf32>
    %20 = vector.multi_reduction <add>, %19, %cst_14 [0] : vector<32x128xf32> to vector<128xf32>
    %21 = vector.shape_cast %20 : vector<128xf32> to vector<1x128xf32>
    %c0_15 = arith.constant 0 : index
    %22 = memref.load %arg7[%c0_15] : memref<1xf32, #tpu.memory_space<smem>>
    %23 = vector.broadcast %22 : f32 to vector<1x128xf32>
    %24 = arith.addf %21, %23 : vector<1x128xf32>
    %c0_16 = arith.constant 0 : index
    %c0_17 = arith.constant 0 : index
    %25 = vector.load %arg8[%c0_16, %c0_17] : memref<1x128xf32, #tpu.memory_space<vmem>>, vector<1x128xf32>
    tpu.vector_store %arg8[%c0_16, %c0_17], %24 {strides = array<i32>} : memref<1x128xf32, #tpu.memory_space<vmem>>, vector<1x128xf32>,
    return
  }
  func.func @transform_0(%arg0: i32) -> (i32, i32) {
    %c0_i32 = arith.constant 0 : i32
    %c0_i32_0 = arith.constant 0 : i32
    return %arg0, %c0_i32 : i32, i32
  }
  func.func @transform_1(%arg0: i32) -> (i32, i32) {
    %c0_i32 = arith.constant 0 : i32
    %c0_i32_0 = arith.constant 0 : i32
    %c0_i32_1 = arith.constant 0 : i32
    return %c0_i32, %c0_i32_0 : i32, i32
  }
  func.func @transform_2(%arg0: i32) -> (i32, i32) {
    %c0_i32 = arith.constant 0 : i32
    %c0_i32_0 = arith.constant 0 : i32
    %c0_i32_1 = arith.constant 0 : i32
    return %c0_i32, %c0_i32_0 : i32, i32
  }
  func.func @transform_3(%arg0: i32) -> (i32, i32) {
    %c0_i32 = arith.constant 0 : i32
    %c0_i32_0 = arith.constant 0 : i32
    %c0_i32_1 = arith.constant 0 : i32
    return %c0_i32, %c0_i32_0 : i32, i32
  }
  func.func @transform_4(%arg0: i32) -> (i32, i32) {
    %c0_i32 = arith.constant 0 : i32
    %c0_i32_0 = arith.constant 0 : i32
    %c0_i32_1 = arith.constant 0 : i32
    return %c0_i32, %c0_i32_0 : i32, i32
  }
  func.func @transform_5(%arg0: i32) -> (i32, i32) {
    %c0_i32 = arith.constant 0 : i32
    %c0_i32_0 = arith.constant 0 : i32
    %c0_i32_1 = arith.constant 0 : i32
    return %c0_i32, %c0_i32_0 : i32, i32
  }
  func.func @transform_6(%arg0: i32) -> i32 {
    %c0_i32 = arith.constant 0 : i32
    %c0_i32_0 = arith.constant 0 : i32
    return %c0_i32 : i32
  }
  func.func @transform_7(%arg0: i32) -> (i32, i32) {
    %c0_i32 = arith.constant 0 : i32
    %c0_i32_0 = arith.constant 0 : i32
    return %c0_i32, %arg0 : i32, i32
  }
}

</mosaic_0001>

<bundles_post_ra>
// kernel: value_network_forward.1
= control target key start
LH: loop header
LB: loop body
LE: loop exit
PB: predicated region body
PF: predicated region fallthrough
CT: control target
= control target key end

     0   :  { %vm90_vm0 = vcmask 130048   ;;  %v295_v16 = vmov 0   ;;  %vm184_vm1 = vcmask 261120   ;;  %s448_s0 = inlined_call_operand.vmem [shape: f32[128,16], index: 0, kind: input, shape index: {}]   ;;  %s449_s2 = inlined_call_operand.vmem [shape: f32[32,1], index: 2, kind: input, shape index: {}]   ;;  %s450_s4 = inlined_call_operand.vmem [shape: f32[32,1], index: 4, kind: input, shape index: {}]   ;;  %s451_s5 = inlined_call_operand.vmem [shape: f32[32,1], index: 5, kind: input, shape index: {}]   ;;  %s452_s1 = inlined_call_operand.vmem [shape: bf16[32,16], index: 1, kind: input, shape index: {}]   ;;  %s453_s3 = inlined_call_operand.vmem [shape: bf16[32,32], index: 3, kind: input, shape index: {}]   ;;  %s454_s6 = inlined_call_operand.<no memory space> [shape: f32[1], index: 6, kind: input, shape index: {}]   ;;  %s455_s7 = inlined_call_operand.vmem [shape: f32[1,128], index: 7, kind: output, shape index: {}]  }
   0x1   :  { %v42_v0 = vld [vmem:[%s448_s0 + $0x70] sm:$0xff]  ;;  %v43_v1 = vld [vmem:[%s448_s0 + $0x78] sm:$0xff]  ;;  %v40_v3 = vld [vmem:[%s448_s0 + $0x60] sm:$0xff]  ;;  %292 = vset.pattern.permute.xlu0 %v295_v16  ;;  %293 = vset.pattern.permute.xlu1 %v295_v16 }
   0x2   :  { %v51_v2 = vpack.c.bf16 %v43_v1, %v42_v0  ;;  %v41_v4 = vld [vmem:[%s448_s0 + $0x68] sm:$0xff]  ;;  %v38_v8 = vld [vmem:[%s448_s0 + $0x50] sm:$0xff]  ;;  %v39_v9 = vld [vmem:[%s448_s0 + $0x58] sm:$0xff]  ;;  %294 = vset.pattern.permute.xlu2 %v295_v16 }
   0x3   :  { %v50_v6 = vpack.c.bf16 %v41_v4, %v40_v3  ;;  %v49_v10 = vpack.c.bf16 %v39_v9, %v38_v8  ;;  %v36_v12 = vld [vmem:[%s448_s0 + $0x40] sm:$0xff]  ;;  %v37_v13 = vld [vmem:[%s448_s0 + $0x48] sm:$0xff]  ;;  %v58_v14 = vld [vmem:[%s449_s2 + $0x10] sm:$0xff] }
   0x4   :  { %v119_v5 = vsel %vm90_vm0, %v51_v2, 0  ;;  %v48_v15 = vpack.c.bf16 %v37_v13, %v36_v12  ;;  %72 = vperm.xlu0 %292, %v58_v14   ;;  %v34_v18 = vld [vmem:[%s448_s0 + $0x30] sm:$0xff]  ;;  %v35_v19 = vld [vmem:[%s448_s0 + $0x38] sm:$0xff]  ;;  %v56_v20 = vld [vmem:[%s449_s2] sm:$0xff] }
   0x5   :  { %283 = vmatpush.bf16.xpose.msra.mxu2 %v119_v5  ;;  %121 = vmatpush.bf16.xpose.msra.mxu0 %v119_v5  ;;  %v116_v7 = vsel %vm90_vm0, %v50_v6, 0  ;;  %v113_v11 = vsel %vm90_vm0, %v49_v10, 0  ;;  %v47_v21 = vpack.c.bf16 %v35_v19, %v34_v18  ;;  %v32_v23 = vld [vmem:[%s448_s0 + $0x20] sm:$0xff]  ;;  %v33_v24 = vld [vmem:[%s448_s0 + $0x28] sm:$0xff]  ;;  %v59_v25 = vld [vmem:[%s449_s2 + $0x18] sm:$0xff] }
   0x6   :  { %v110_v17 = vsel %vm90_vm0, %v48_v15, 0  ;;  %62 = vperm.xlu1 %293, %v56_v20   ;;  %v57_v26 = vld [vmem:[%s449_s2 + $0x8] sm:$0xff]  ;;  %v46_v27 = vpack.c.bf16 %v33_v24, %v32_v23  ;;  %v30_v29 = vld [vmem:[%s448_s0 + $0x10] sm:$0xff]  ;;  %v31_v30 = vld [vmem:[%s448_s0 + $0x18] sm:$0xff] }
   0x7   :  { %v107_v22 = vsel %vm90_vm0, %v47_v21, 0  ;;  %v152_v31 = vld [vmem:[%s450_s4 + $0x10] sm:$0xff]  ;;  %v153_v32 = vld [vmem:[%s450_s4 + $0x18] sm:$0xff]  ;;  %v45_v33 = vpack.c.bf16 %v31_v30, %v30_v29  ;;  %v28_v35 = vld [vmem:[%s448_s0] sm:$0xff] }
   0x8   :  { %v104_v28 = vsel %vm90_vm0, %v46_v27, 0  ;;  %v29_v36 = vld [vmem:[%s448_s0 + $0x8] sm:$0xff]  ;;  %v216_v38 = vld [vmem:[%s451_s5 + $0x10] sm:$0xff]  ;;  %v279_v42 = vld [vmem:[%s452_s1] sm:$0xff] }
   0x9   :  { %v101_v34 = vsel %vm90_vm0, %v45_v33, 0  ;;  %v215_v37 = vld [vmem:[%s451_s5 + $0x8] sm:$0xff]  ;;  %v44_v39 = vpack.c.bf16 %v29_v36, %v28_v35  ;;  %v150_v43 = vld [vmem:[%s450_s4] sm:$0xff]  ;;  %v217_v1 = vld [vmem:[%s451_s5 + $0x18] sm:$0xff]  ;;  %v252_v35 = vstv %s454_s6 }
   0xa   :  { %v280_v41 = vld [vmem:[%s452_s1 + $0x8] sm:$0xff]  ;;  %156 = vperm.xlu2 %294, %v150_v43   ;;  %v214_v59 = vld [vmem:[%s451_s5] sm:$0xff] }
   0xb   :  { %v98_v40 = vsel %vm90_vm0, %v44_v39, 0  ;;  %v151_v49 = vld [vmem:[%s450_s4 + $0x8] sm:$0xff]  ;;  %v281_v0 = vld [vmem:[%s453_s3] sm:$0xff] }
   0xc   :  { %77 = vperm.xlu0 %292, %v59_v25   ;;  %v282_v2 = vld [vmem:[%s453_s3 + $0x8] sm:$0xff] }
   0xd   :  { %284 = vmatpush.bf16.xpose.msra.mxu2 %v116_v7  ;;  %122 = vmatpush.bf16.xpose.msra.mxu0 %v116_v7 }
   0xe   :  { %67 = vperm.xlu1 %293, %v57_v26  }
  0x12   :  { %161 = vperm.xlu2 %294, %v151_v49  }
  0x14   :  { %166 = vperm.xlu0 %292, %v152_v31  }
  0x15   :  { %285 = vmatpush.bf16.xpose.msra.mxu2 %v113_v11  ;;  %123 = vmatpush.bf16.xpose.msra.mxu0 %v113_v11 }
  0x16   :  { %171 = vperm.xlu1 %293, %v153_v32  }
  0x1a   :  { %220 = vperm.xlu2 %294, %v214_v59  }
  0x1c   :  { %225 = vperm.xlu0 %292, %v215_v37  }
  0x1d   :  { %286 = vmatpush.bf16.xpose.msra.mxu2 %v110_v17  ;;  %124 = vmatpush.bf16.xpose.msra.mxu0 %v110_v17 }
  0x1e   :  { %230 = vperm.xlu1 %293, %v216_v38  }
  0x22   :  { %235 = vperm.xlu2 %294, %v217_v1  }
  0x25   :  { %287 = vmatpush.bf16.xpose.msra.mxu2 %v107_v22  ;;  %125 = vmatpush.bf16.xpose.msra.mxu0 %v107_v22 }
  0x2d   :  { %288 = vmatpush.bf16.xpose.msra.mxu2 %v104_v28  ;;  %126 = vmatpush.bf16.xpose.msra.mxu0 %v104_v28 }
  0x35   :  { %289 = vmatpush.bf16.xpose.msra.mxu2 %v101_v34  ;;  %127 = vmatpush.bf16.xpose.msra.mxu0 %v101_v34 }
  0x3d   :  { %290 = vmatpush.bf16.xpose.msra.mxu2 %v98_v40  ;;  %128 = vmatpush.bf16.xpose.msra.mxu0 %v98_v40 }
  0x44   :  { %268 = vmatmul.msk.bf16.vlgmr.msra.gmra.mxu2 %vm90_vm0, %v280_v41  ;;  %267 = vmatmul.msk.bf16.vlgmr.msra.gmra.mxu0 %vm90_vm0, %v279_v42 }
  0x64   :  { %v157_v3 = vpop.permute.xlu2 %156 }
  0x6c   :  { %v162_v5 = vpop.permute.xlu2 %161 }
  0x74   :  { %v221_v13 = vpop.permute.xlu2 %220 }
  0x76   :  { %v73_v45 = vpop.permute.xlu0 %72 }
  0x78   :  { %v63_v46 = vpop.permute.xlu1 %62 }
  0x7c   :  { %v236_v26 = vpop.permute.xlu2 %235 }
  0x7e   :  { %v78_v50 = vpop.permute.xlu0 %77 }
  0x80   :  { %v68_v52 = vpop.permute.xlu1 %67 }
  0x86   :  { %v167_v7 = vpop.permute.xlu0 %166 }
  0x88   :  { %v172_v8 = vpop.permute.xlu1 %171 }
  0x8e   :  { %v226_v17 = vpop.permute.xlu0 %225 }
  0x90   :  { %v231_v19 = vpop.permute.xlu1 %230 }
  0xc1   :  { %v130_v44 = vpop.f32.mrf.mxu0 }
  0xc2   :  { %v131_v54 = vadd.f32 %v130_v44, %v63_v46 }
  0xc4   :  { %v140_v60 = vmax.f32 %v131_v54, 0.0 }
  0xc7   :  { %v135_v47 = vpop.f32.mrf.mxu2 }
  0xc8   :  { %v136_v51 = vadd.f32 %v135_v47, %v73_v45 }
  0xc9   :  { %v132_v48 = vpop.f32.mrf.mxu0 }
  0xca   :  { %v133_v55 = vadd.f32 %v132_v48, %v68_v52  ;;  %v142_v57 = vmax.f32 %v136_v51, 0.0 }
  0xcc   :  { %v141_v61 = vmax.f32 %v133_v55, 0.0 }
  0xce   :  { %v148_v63 = vpack.c.bf16 %v141_v61, %v140_v60 }
  0xcf   :  { %v137_v53 = vpop.f32.mrf.mxu2 }
  0xd0   :  { %v138_v56 = vadd.f32 %v137_v53, %v78_v50 }
  0xd2   :  { %v143_v58 = vmax.f32 %v138_v56, 0.0 }
  0xd4   :  { %v149_v62 = vpack.c.bf16 %v143_v58, %v142_v57 }
  0xd6   :  { %197 = vmatpush.bf16.msra.mxu1 %v149_v62 }
  0xda   :  { %198 = vmatpush.bf16.msra.mxu1 %v148_v63 }
  0xdd   :  { %277 = vmatmul.msk.bf16.vlgmr.msra.gmra.mxu1 %vm184_vm1, %v281_v0 }
  0xed   :  { %278 = vmatmul.msk.bf16.gmra.mxu1 %vm184_vm1, %v282_v2 }
 0x15a   :  { %v200_v4 = vpop.f32.mrf.mxu1 }
 0x15b   :  { %v201_v11 = vadd.f32 %v200_v4, %v157_v3 }
 0x15d   :  { %v210_v15 = vmax.f32 %v201_v11, 0.0 }
 0x15f   :  { %v238_v21 = vmul.f32 %v221_v13, %v210_v15 }
 0x162   :  { %v202_v6 = vpop.f32.mrf.mxu1 }
 0x163   :  { %v203_v9 = vadd.f32 %v202_v6, %v162_v5 }
 0x165   :  { %v211_v14 = vmax.f32 %v203_v9, 0.0 }
 0x167   :  { %v239_v18 = vmul.f32 %v226_v17, %v211_v14 }
 0x169   :  { %v242_v24 = vadd.f32 %v239_v18, %v238_v21 }
 0x16a   :  { %v205_v10 = vpop.f32.mrf.mxu1 }
 0x16b   :  { %v206_v12 = vadd.f32 %v205_v10, %v167_v7 }
 0x16d   :  { %v212_v16 = vmax.f32 %v206_v12, 0.0 }
 0x16f   :  { %v240_v22 = vmul.f32 %v231_v19, %v212_v16 }
 0x171   :  { %v243_v27 = vadd.f32 %v242_v24, %v240_v22 }
 0x172   :  { %v207_v20 = vpop.f32.mrf.mxu1 }
 0x173   :  { %v208_v23 = vadd.f32 %v207_v20, %v172_v8 }
 0x175   :  { %v213_v25 = vmax.f32 %v208_v23, 0.0 }
 0x177   :  { %v241_v28 = vmul.f32 %v236_v26, %v213_v25 }
 0x179   :  { %v244_v29 = vadd.f32 %v243_v27, %v241_v28 }
 0x17b   :  { %v245_v30 = vrot.slane %v244_v29, 4 }
 0x17d   :  { %v246_v31 = vadd.f32 %v245_v30, %v244_v29 }
 0x17f   :  { %v247_v32 = vrot.slane %v246_v31, 2 }
 0x181   :  { %v248_v33 = vadd.f32 %v247_v32, %v246_v31 }
 0x183   :  { %v249_v34 = vrot.slane %v248_v33, 1 }
 0x185   :  { %v250_v36 = vadd.f32 %v249_v34, %v248_v33 }
 0x187   :  { %v253_v37 = vadd.f32 %v252_v35, %v250_v36 }
 0x189   :  { %254 = vst [vmem:[%s455_s7] sm:$0x1] %v253_v37 }

</bundles_post_ra>
